<compile_context>
chip_gen: v5e
topology: v5e:2x2
jax: 0.10.0
libtpu: 0.0.40
codegen_flags: <defaults>
</compile_context>

<pallas_src>
import math
import functools

import jax
import jax.numpy as jnp
from jax.experimental import pallas as pl
from jax.experimental.pallas import tpu as pltpu


# --------------------------------------------------------------------------- #
# Kernels
# --------------------------------------------------------------------------- #
def _kv_proj_kernel(x_ref, wk_ref, bk_ref, wv_ref, bv_ref, k_ref, v_ref,
                    *, num_heads):
    """Per-batch K/V projection into head-major (H, L, dh) bf16 outputs."""
    x = x_ref[...]                                            # (L, D) bf16

    def body(h, carry):
        k = jnp.dot(x, wk_ref[h], preferred_element_type=jnp.float32) + bk_ref[h]
        v = jnp.dot(x, wv_ref[h], preferred_element_type=jnp.float32) + bv_ref[h]
        k_ref[h] = k.astype(k_ref.dtype)                      # (L, dh) full-tile store
        v_ref[h] = v.astype(v_ref.dtype)
        return carry

    jax.lax.fori_loop(0, num_heads, body, 0)


def _attention_kernel(xq_ref, mask_ref, k_ref, v_ref,
                      wq_ref, bq_ref, wo_ref, bo_ref, gamma_ref, beta_ref,
                      out_ref, *, num_heads, ln_eps):
    """Q projection + softmax attention + output dense + residual + LayerNorm."""
    x_res = xq_ref[...].astype(jnp.float32)                   # (TQ, D) f32 residual
    xq_bf = x_res.astype(jnp.bfloat16)                        # MXU input
    add_mask = mask_ref[...]                                  # (1, L) additive mask

    def head_body(h, acc):
        # Q projection for head h; 1/sqrt(dh) is pre-folded into wq/bq.
        q_h = jnp.dot(xq_bf, wq_ref[h],
                      preferred_element_type=jnp.float32) + bq_ref[h]   # (TQ, dh)
        k_h = k_ref[h]                                        # (L, dh) bf16, head-major
        v_h = v_ref[h]                                        # (L, dh) bf16

        # Contract over dh directly (no k.T materialized -> no XLU transpose).
        scores = jax.lax.dot_general(
            q_h.astype(jnp.bfloat16), k_h, (((1,), (1,)), ((), ())),
            preferred_element_type=jnp.float32) + add_mask    # (TQ, L) f32

        m = jnp.max(scores, axis=-1, keepdims=True)
        p = jnp.exp(scores - m)                               # f32 (EUP exp)
        inv_denom = pl.reciprocal(jnp.sum(p, axis=-1, keepdims=True), approx=True)

        # Deferred normalization: scale the (TQ, dh) context, not (TQ, L) probs.
        ctx = jnp.dot(p.astype(jnp.bfloat16), v_h,
                      preferred_element_type=jnp.float32) * inv_denom   # (TQ, dh)

        # Per-head output projection accumulated straight into (TQ, D):
        # no lane-sliced context stores, identical total flops.
        return acc + jnp.dot(ctx.astype(jnp.bfloat16), wo_ref[h],
                             preferred_element_type=jnp.float32)

    acc0 = jnp.zeros(x_res.shape, jnp.float32)
    unroll = 2 if (num_heads % 2 == 0) else 1
    proj = jax.lax.fori_loop(0, num_heads, head_body, acc0, unroll=unroll)

    # Output dense bias + residual + LayerNorm (single-pass variance), all f32.
    h_state = proj + bo_ref[...] + x_res
    mu = jnp.mean(h_state, axis=-1, keepdims=True)
    var = jnp.mean(h_state * h_state, axis=-1, keepdims=True) - mu * mu
    y = (h_state - mu) * jax.lax.rsqrt(var + ln_eps)
    out_ref[...] = (y * gamma_ref[...] + beta_ref[...]).astype(out_ref.dtype)


# --------------------------------------------------------------------------- #
# Builders / wrapper
# --------------------------------------------------------------------------- #
def _vmem_limit_bytes():
    cap = 64 * 1024 * 1024          # v7x per-TensorCore VMEM (smallest current gen)
    try:
        cap = int(pltpu.get_tpu_info().vmem_capacity_bytes)
    except Exception:
        pass
    return max(32 * 1024 * 1024, min(cap - (16 << 20), 100 * 1024 * 1024))


def _pick_tq(L, vmem_limit):
    cap = 512 if vmem_limit >= (100 << 20) else 256   # bigger tiles on v5e/v6e
    for t in (cap, 256, 128, 64, 32, 16, 8):
        if t <= L and L % t == 0:
            return t
    return L


@functools.lru_cache(maxsize=16)
def _build_calls(N, L, D, TQ, num_heads, head_size, out_dtype, ln_eps, vmem_limit):
    H, dh = num_heads, head_size

    kv_call = pl.pallas_call(
        functools.partial(_kv_proj_kernel, num_heads=H),
        out_shape=(jax.ShapeDtypeStruct((N, H, L, dh), jnp.bfloat16),
                   jax.ShapeDtypeStruct((N, H, L, dh), jnp.bfloat16)),
        grid_spec=pltpu.PrefetchScalarGridSpec(
            num_scalar_prefetch=0,
            grid=(N,),
            in_specs=[
                pl.BlockSpec((None, L, D), lambda b: (b, 0, 0)),      # x (bf16)
                pl.BlockSpec((H, D, dh), lambda b: (0, 0, 0)),        # Wk^T per head
                pl.BlockSpec((H, 1, dh), lambda b: (0, 0, 0)),        # bk per head
                pl.BlockSpec((H, D, dh), lambda b: (0, 0, 0)),        # Wv^T per head
                pl.BlockSpec((H, 1, dh), lambda b: (0, 0, 0)),        # bv per head
            ],
            out_specs=[
                pl.BlockSpec((None, H, L, dh), lambda b: (b, 0, 0, 0)),
                pl.BlockSpec((None, H, L, dh), lambda b: (b, 0, 0, 0)),
            ],
        ),
        compiler_params=pltpu.CompilerParams(
            dimension_semantics=("parallel",),
            vmem_limit_bytes=vmem_limit,
        ),
    )

    cost = pl.CostEstimate(
        flops=int(N * (4 * L * D * D + 4 * L * L * D)),
        transcendentals=int(N * H * L * L),
        bytes_accessed=int(4 * 2 * N * L * D          # f32 x in + f32 out
                           + 2 * 2 * N * L * D        # bf16 K + V in
                           + 4 * N * L                # mask
                           + 2 * 2 * D * D + 4 * 8 * D),
    )

    attn_call = pl.pallas_call(
        functools.partial(_attention_kernel, num_heads=H, ln_eps=ln_eps),
        out_shape=jax.ShapeDtypeStruct((N, L, D), out_dtype),
        grid_spec=pltpu.PrefetchScalarGridSpec(
            num_scalar_prefetch=0,
            grid=(N, L // TQ),
            in_specs=[
                pl.BlockSpec((None, TQ, D), lambda b, qt: (b, qt, 0)),       # x tile (f32)
                pl.BlockSpec((None, 1, L), lambda b, qt: (b, 0, 0)),         # additive mask
                pl.BlockSpec((None, H, L, dh), lambda b, qt: (b, 0, 0, 0)),  # K (bf16)
                pl.BlockSpec((None, H, L, dh), lambda b, qt: (b, 0, 0, 0)),  # V (bf16)
                pl.BlockSpec((H, D, dh), lambda b, qt: (0, 0, 0)),           # Wq^T*s per head
                pl.BlockSpec((H, 1, dh), lambda b, qt: (0, 0, 0)),           # bq*s per head
                pl.BlockSpec((H, dh, D), lambda b, qt: (0, 0, 0)),           # Wo^T per head
                pl.BlockSpec((1, D), lambda b, qt: (0, 0)),                  # bo
                pl.BlockSpec((1, D), lambda b, qt: (0, 0)),                  # gamma
                pl.BlockSpec((1, D), lambda b, qt: (0, 0)),                  # beta
            ],
            out_specs=pl.BlockSpec((None, TQ, D), lambda b, qt: (b, qt, 0)),
        ),
        compiler_params=pltpu.CompilerParams(
            dimension_semantics=("parallel", "parallel"),
            vmem_limit_bytes=vmem_limit,
        ),
        cost_estimate=cost,
    )
    return kv_call, attn_call


def bert_attention_pallas(x, key_mask, params, *, num_heads, ln_eps=1e-5):
    """x: (N, L, D) float32; key_mask: (N, L) with 1.0 = attend, 0.0 = masked."""
    N, L, D = x.shape
    assert D % num_heads == 0
    dh = D // num_heads

    vmem_limit = _vmem_limit_bytes()
    TQ = _pick_tq(L, vmem_limit)
    kv_call, attn_call = _build_calls(N, L, D, TQ, num_heads, dh, x.dtype,
                                      float(ln_eps), int(vmem_limit))

    # One-time host-side weight prep: (out,in) -> head-major (H, in, dh),
    # bf16 for the MXU, with 1/sqrt(dh) folded into Wq and bq.
    inv_s = 1.0 / math.sqrt(dh)

    def head_major(w):                       # (out, in) -> (H, in, dh)
        return jnp.transpose(jnp.reshape(w.T, (D, num_heads, dh)), (1, 0, 2))

    wq_h = (head_major(params["wq"]) * inv_s).astype(jnp.bfloat16)
    bq_h = (params["bq"] * inv_s).reshape(num_heads, 1, dh).astype(jnp.float32)
    wk_h = head_major(params["wk"]).astype(jnp.bfloat16)
    bk_h = params["bk"].reshape(num_heads, 1, dh).astype(jnp.float32)
    wv_h = head_major(params["wv"]).astype(jnp.bfloat16)
    bv_h = params["bv"].reshape(num_heads, 1, dh).astype(jnp.float32)
    wo_h = params["wo"].T.reshape(num_heads, dh, D).astype(jnp.bfloat16)
    bo = params["bo"].reshape(1, D).astype(jnp.float32)
    gamma = params["ln_gamma"].reshape(1, D).astype(jnp.float32)
    beta = params["ln_beta"].reshape(1, D).astype(jnp.float32)

    # KV-side input pre-cast to bf16 (halves DMA bytes / VMEM for that pass).
    x_bf = x.astype(jnp.bfloat16)
    k, v = kv_call(x_bf, wk_h, bk_h, wv_h, bv_h)

    # Additive key mask precomputed once on the host: (N, 1, L).
    mask_add = ((1.0 - key_mask.astype(jnp.float32)) * (-10000.0)).reshape(N, 1, L)

    return attn_call(x, mask_add, k, v, wq_h, bq_h, wo_h, bo, gamma, beta)


# --------------------------------------------------------------------------- #
# Pure-JAX f32 reference (dropout = identity)
# --------------------------------------------------------------------------- #
def bert_attention_ref(x, key_mask, params, *, num_heads, ln_eps=1e-5):
    N, L, D = x.shape
    dh = D // num_heads

    def lin(t, w, b):
        return jnp.einsum("nld,od->nlo", t, w) + b

    q = lin(x, params["wq"], params["bq"]).reshape(N, L, num_heads, dh).transpose(0, 2, 1, 3)
    k = lin(x, params["wk"], params["bk"]).reshape(N, L, num_heads, dh).transpose(0, 2, 1, 3)
    v = lin(x, params["wv"], params["bv"]).reshape(N, L, num_heads, dh).transpose(0, 2, 1, 3)

    scores = jnp.einsum("nhqd,nhkd->nhqk", q, k) / math.sqrt(dh)
    scores = scores + (1.0 - key_mask)[:, None, None, :] * (-10000.0)
    probs = jax.nn.softmax(scores, axis=-1)
    ctx = jnp.einsum("nhqk,nhkd->nhqd", probs, v).transpose(0, 2, 1, 3).reshape(N, L, D)

    proj = lin(ctx, params["wo"], params["bo"])
    h = proj + x
    mu = jnp.mean(h, axis=-1, keepdims=True)
    var = jnp.mean((h - mu) ** 2, axis=-1, keepdims=True)
    return (h - mu) / jnp.sqrt(var + ln_eps) * params["ln_gamma"] + params["ln_beta"]


if __name__ == "__main__":
    # Config: hidden_size=32, num_attention_heads=4, seq=8, batch=2.
    N, L, D, H = 2, 8, 32, 4

    key = jax.random.PRNGKey(0)
    keys = jax.random.split(key, 10)

    scale = 0.05
    params = {
        "wq": scale * jax.random.normal(keys[0], (D, D), jnp.float32),
        "bq": scale * jax.random.normal(keys[1], (D,), jnp.float32),
        "wk": scale * jax.random.normal(keys[2], (D, D), jnp.float32),
        "bk": scale * jax.random.normal(keys[3], (D,), jnp.float32),
        "wv": scale * jax.random.normal(keys[4], (D, D), jnp.float32),
        "bv": scale * jax.random.normal(keys[5], (D,), jnp.float32),
        "wo": scale * jax.random.normal(keys[6], (D, D), jnp.float32),
        "bo": scale * jax.random.normal(keys[7], (D,), jnp.float32),
        "ln_gamma": jnp.ones((D,), jnp.float32),
        "ln_beta": jnp.zeros((D,), jnp.float32),
    }

    x = jax.random.normal(keys[8], (N, L, D), jnp.float32)
    # Key mask (N, L): last 2 key positions of the second batch element masked out.
    key_mask = jnp.ones((N, L), jnp.float32).at[1, L - 2:].set(0.0)

    out = bert_attention_pallas(x, key_mask, params, num_heads=H)
    out = jax.block_until_ready(out)

    ref = bert_attention_ref(x, key_mask, params, num_heads=H)
    assert out.shape == (N, L, D)
    # bf16 MXU inputs + EUP approx reciprocal -> looser tolerance vs f32 reference.
    err = jnp.max(jnp.abs(out - ref))
    assert jnp.allclose(out, ref, atol=2e-2, rtol=2e-2), \
        f"mismatch vs reference (max abs err {err})"

    print("KERNEL_OK")
</pallas_src>

<mosaic_0001>
module attributes {stable_mosaic.version = 11 : i64} {
  func.func @_kv_proj_kernel(%arg0: i32, %arg1: memref<1x8x32xbf16, #tpu.memory_space<vmem>>, %arg2: memref<4x32x8xbf16, #tpu.memory_space<vmem>>, %arg3: memref<4x1x8xf32, #tpu.memory_space<vmem>>, %arg4: memref<4x32x8xbf16, #tpu.memory_space<vmem>>, %arg5: memref<4x1x8xf32, #tpu.memory_space<vmem>>, %arg6: memref<1x4x8x8xbf16, #tpu.memory_space<vmem>>, %arg7: memref<1x4x8x8xbf16, #tpu.memory_space<vmem>>) attributes {dimension_semantics = [#tpu.dimension_semantics<parallel>], iteration_bounds = array<i64: 2>, scalar_prefetch = 0 : i64, scratch_operands = 0 : i64, tpu.core_type = #tpu.core_type<tc>, window_params = [{transform_indices = @transform_0, window_bounds = array<i64: 1, 8, 32>}, {pipeline_mode = #tpu.pipeline_mode<synchronous>, transform_indices = @transform_1, window_bounds = array<i64: 4, 32, 8>}, {pipeline_mode = #tpu.pipeline_mode<synchronous>, transform_indices = @transform_2, window_bounds = array<i64: 4, 1, 8>}, {pipeline_mode = #tpu.pipeline_mode<synchronous>, transform_indices = @transform_3, window_bounds = array<i64: 4, 32, 8>}, {pipeline_mode = #tpu.pipeline_mode<synchronous>, transform_indices = @transform_4, window_bounds = array<i64: 4, 1, 8>}, {transform_indices = @transform_5, window_bounds = array<i64: 1, 4, 8, 8>}, {transform_indices = @transform_6, window_bounds = array<i64: 1, 4, 8, 8>}]} {
    %c0 = arith.constant 0 : index
    %c0_0 = arith.constant 0 : index
    %c0_1 = arith.constant 0 : index
    %0 = vector.load %arg1[%c0, %c0_0, %c0_1] : memref<1x8x32xbf16, #tpu.memory_space<vmem>>, vector<1x8x32xbf16>
    %1 = vector.shape_cast %0 : vector<1x8x32xbf16> to vector<8x32xbf16>
    %c0_i32 = arith.constant 0 : i32
    %c4_i32 = arith.constant 4 : i32
    %2 = arith.addi %c0_i32, %c4_i32 : i32
    %c1_i32 = arith.constant 1 : i32
    scf.for %arg8 = %c0_i32 to %2 step %c1_i32  : i32 {
      %3 = arith.index_cast %arg8 : i32 to index
      %c0_3 = arith.constant 0 : index
      %c0_4 = arith.constant 0 : index
      %4 = vector.load %arg2[%3, %c0_3, %c0_4] : memref<4x32x8xbf16, #tpu.memory_space<vmem>>, vector<1x32x8xbf16>
      %5 = vector.shape_cast %4 : vector<1x32x8xbf16> to vector<32x8xbf16>
      %cst = arith.constant dense<0.000000e+00> : vector<8x8xf32>
      %6 = tpu.matmul %1, %5, %cst {dimension_numbers = #tpu.dot_dimension_numbers<[1], [0], [0], [1], [0, 0, 1, 1], [], []>} : vector<8x32xbf16>, vector<32x8xbf16>, vector<8x8xf32> -> vector<8x8xf32>
      %7 = arith.index_cast %arg8 : i32 to index
      %c0_5 = arith.constant 0 : index
      %c0_6 = arith.constant 0 : index
      %8 = vector.load %arg3[%7, %c0_5, %c0_6] : memref<4x1x8xf32, #tpu.memory_space<vmem>>, vector<1x1x8xf32>
      %9 = vector.shape_cast %8 : vector<1x1x8xf32> to vector<1x8xf32>
      %10 = vector.broadcast %9 : vector<1x8xf32> to vector<8x8xf32>
      %11 = arith.addf %6, %10 : vector<8x8xf32>
      %12 = arith.index_cast %arg8 : i32 to index
      %c0_7 = arith.constant 0 : index
      %c0_8 = arith.constant 0 : index
      %13 = vector.load %arg4[%12, %c0_7, %c0_8] : memref<4x32x8xbf16, #tpu.memory_space<vmem>>, vector<1x32x8xbf16>
      %14 = vector.shape_cast %13 : vector<1x32x8xbf16> to vector<32x8xbf16>
      %cst_9 = arith.constant dense<0.000000e+00> : vector<8x8xf32>
      %15 = tpu.matmul %1, %14, %cst_9 {dimension_numbers = #tpu.dot_dimension_numbers<[1], [0], [0], [1], [0, 0, 1, 1], [], []>} : vector<8x32xbf16>, vector<32x8xbf16>, vector<8x8xf32> -> vector<8x8xf32>
      %16 = arith.index_cast %arg8 : i32 to index
      %c0_10 = arith.constant 0 : index
      %c0_11 = arith.constant 0 : index
      %17 = vector.load %arg5[%16, %c0_10, %c0_11] : memref<4x1x8xf32, #tpu.memory_space<vmem>>, vector<1x1x8xf32>
      %18 = vector.shape_cast %17 : vector<1x1x8xf32> to vector<1x8xf32>
      %19 = vector.broadcast %18 : vector<1x8xf32> to vector<8x8xf32>
      %20 = arith.addf %15, %19 : vector<8x8xf32>
      %21 = arith.truncf %11 : vector<8x8xf32> to vector<8x8xbf16>
      %c0_12 = arith.constant 0 : index
      %22 = arith.index_cast %arg8 : i32 to index
      %c0_13 = arith.constant 0 : index
      %c0_14 = arith.constant 0 : index
      %23 = vector.load %arg6[%c0_12, %22, %c0_13, %c0_14] : memref<1x4x8x8xbf16, #tpu.memory_space<vmem>>, vector<1x1x8x8xbf16>
      %24 = vector.shape_cast %23 : vector<1x1x8x8xbf16> to vector<8x8xbf16>
      %25 = vector.shape_cast %21 : vector<8x8xbf16> to vector<1x1x8x8xbf16>
      tpu.vector_store %arg6[%c0_12, %22, %c0_13, %c0_14], %25 {strides = array<i32>} : memref<1x4x8x8xbf16, #tpu.memory_space<vmem>>, vector<1x1x8x8xbf16>,
      %26 = arith.truncf %20 : vector<8x8xf32> to vector<8x8xbf16>
      %c0_15 = arith.constant 0 : index
      %27 = arith.index_cast %arg8 : i32 to index
      %c0_16 = arith.constant 0 : index
      %c0_17 = arith.constant 0 : index
      %28 = vector.load %arg7[%c0_15, %27, %c0_16, %c0_17] : memref<1x4x8x8xbf16, #tpu.memory_space<vmem>>, vector<1x1x8x8xbf16>
      %29 = vector.shape_cast %28 : vector<1x1x8x8xbf16> to vector<8x8xbf16>
      %30 = vector.shape_cast %26 : vector<8x8xbf16> to vector<1x1x8x8xbf16>
      tpu.vector_store %arg7[%c0_15, %27, %c0_16, %c0_17], %30 {strides = array<i32>} : memref<1x4x8x8xbf16, #tpu.memory_space<vmem>>, vector<1x1x8x8xbf16>,
    }
    %c4_i32_2 = arith.constant 4 : i32
    return
  }
  func.func @transform_0(%arg0: i32) -> (i32, i32, i32) {
    %c0_i32 = arith.constant 0 : i32
    %c0_i32_0 = arith.constant 0 : i32
    %c0_i32_1 = arith.constant 0 : i32
    return %arg0, %c0_i32, %c0_i32_0 : i32, i32, i32
  }
  func.func @transform_1(%arg0: i32) -> (i32, i32, i32) {
    %c0_i32 = arith.constant 0 : i32
    %c0_i32_0 = arith.constant 0 : i32
    %c0_i32_1 = arith.constant 0 : i32
    %c0_i32_2 = arith.constant 0 : i32
    return %c0_i32, %c0_i32_0, %c0_i32_1 : i32, i32, i32
  }
  func.func @transform_2(%arg0: i32) -> (i32, i32, i32) {
    %c0_i32 = arith.constant 0 : i32
    %c0_i32_0 = arith.constant 0 : i32
    %c0_i32_1 = arith.constant 0 : i32
    %c0_i32_2 = arith.constant 0 : i32
    return %c0_i32, %c0_i32_0, %c0_i32_1 : i32, i32, i32
  }
  func.func @transform_3(%arg0: i32) -> (i32, i32, i32) {
    %c0_i32 = arith.constant 0 : i32
    %c0_i32_0 = arith.constant 0 : i32
    %c0_i32_1 = arith.constant 0 : i32
    %c0_i32_2 = arith.constant 0 : i32
    return %c0_i32, %c0_i32_0, %c0_i32_1 : i32, i32, i32
  }
  func.func @transform_4(%arg0: i32) -> (i32, i32, i32) {
    %c0_i32 = arith.constant 0 : i32
    %c0_i32_0 = arith.constant 0 : i32
    %c0_i32_1 = arith.constant 0 : i32
    %c0_i32_2 = arith.constant 0 : i32
    return %c0_i32, %c0_i32_0, %c0_i32_1 : i32, i32, i32
  }
  func.func @transform_5(%arg0: i32) -> (i32, i32, i32, i32) {
    %c0_i32 = arith.constant 0 : i32
    %c0_i32_0 = arith.constant 0 : i32
    %c0_i32_1 = arith.constant 0 : i32
    %c0_i32_2 = arith.constant 0 : i32
    return %arg0, %c0_i32, %c0_i32_0, %c0_i32_1 : i32, i32, i32, i32
  }
  func.func @transform_6(%arg0: i32) -> (i32, i32, i32, i32) {
    %c0_i32 = arith.constant 0 : i32
    %c0_i32_0 = arith.constant 0 : i32
    %c0_i32_1 = arith.constant 0 : i32
    %c0_i32_2 = arith.constant 0 : i32
    return %arg0, %c0_i32, %c0_i32_0, %c0_i32_1 : i32, i32, i32, i32
  }
}

</mosaic_0001>

<bundles_post_ra>
// kernel: tpu_custom_call.1
= control target key start
LH: loop header
LB: loop body
LE: loop exit
PB: predicated region body
PF: predicated region fallthrough
CT: control target
= control target key end

     0   :  { %s878_s0 = inlined_call_operand.vmem [shape: bf16[2,8,32], index: 0, kind: input, shape index: {}]   ;;  %s879_s1 = inlined_call_operand.vmem [shape: bf16[4,32,8], index: 1, kind: input, shape index: {}]   ;;  %s880_s2 = inlined_call_operand.vmem [shape: f32[4,1,8], index: 2, kind: input, shape index: {}]   ;;  %s881_s3 = inlined_call_operand.vmem [shape: bf16[4,32,8], index: 3, kind: input, shape index: {}]   ;;  %s882_s4 = inlined_call_operand.vmem [shape: f32[4,1,8], index: 4, kind: input, shape index: {}]   ;;  %s883_s5 = inlined_call_operand.hbm [shape: bf16[2,4,8,8], index: 5, kind: output, shape index: {0}]   ;;  %s884_s6 = inlined_call_operand.hbm [shape: bf16[2,4,8,8], index: 6, kind: output, shape index: {1}]  }
   0x1   :  { %885 = sst [smem:[#allocation8_spill]] %s878_s0 }
   0x2   :  { %886 = sst [smem:[#allocation9_spill]] %s879_s1 }
   0x3   :  { %12 = vsyncpa [#allocation3], 0 }
   0x4   :  { %14 = vsyncpa [#allocation3 + $0x1], 0 }
   0x5   :  { %15 = vsyncpa [#allocation5], 0 }
   0x6   :  { %17 = vsyncpa [#allocation5 + $0x1], 0  ;;  %s743_s21 = smov 0   ;;  %s745_s22 = smov 0  }
   0x7   :  { %s747_s23 = smov 0   ;;  %s749_s24 = smov 0  }
   0x8 LB: > { %s764_s25 = sadd.s32 4294967295, %s700_s24   ;;  %s500_s26 = sadd.s32 4294967294, %s700_s24   ;;  %s700_s24 = sphi %s749_s24, %s894_s24   ;;  %s696_s23 = sphi %s747_s23, %s893_s23   ;;  %s692_s22 = sphi %s745_s22, %s892_s22   ;;  %s688_s21 = sphi %s743_s21, %s891_s21  }
   0x9   : > { %s768_s27 = sadd.s32 1, %s700_s24   ;;  %s140_s28 = sadd.s32 1, %s696_s23 }
   0xa   : > { %s137_s29 = ssub.s32 %s700_s24, %s768_s27  ;;  %p150_p0 = scmp.ne.s32.totalorder %s696_s23, %s692_s22 }
   0xb   : > { %p138_p1 = scmp.eq.s32.totalorder %s137_s29, 0  ;;  %p151_p2 = scmp.eq.s32.totalorder %s764_s25, 1 }
   0xc   : > { %p156_p3 = scmp.ne.s32.totalorder %s692_s22, %s688_s21  ;;  %p157_p4 = scmp.eq.s32.totalorder %s500_s26, 1 }
   0xd   : > { %s779_s30 = scalar_select %p138_p1, %s696_s23, %s140_s28  }
   0xe   : > { %p781_p5 = por %p151_p2, %p150_p0  ;;  %p785_p6 = por %p157_p4, %p156_p3 }
   0xf   : > { %p503_p7 = scmp.ge.s32.totalorder %s700_s24, 1  ;;  %p220_p8 = scmp.lt.s32.totalorder %s700_s24, 3 }
  0x11   : > { %p221_p9 = pnand %p503_p7, %p220_p8 }
  0x12   : > { %s792_s9 = sand.u32 (!%p221_p9), 1, %s692_s22   ;;  %p254_p10 = scmp.lt.s32.totalorder (!%p221_p9), %s764_s25, 1 }
  0x13   : > { %224 = sbr.rel (%p221_p9) target bundleno = 196 (0xc4), region = 40  ;;  %s504_s10 = sshll.u32 (!%p221_p9), %s792_s9, 4 }
  0x14   : > { %s889_s0 = sld [smem:[#allocation8_spill]] (!%p221_p9)  ;;  %s800_s16 = scalar_lea.vmem (!%p221_p9), [#allocation2], %s504_s10 }
  0x15   : > { %s802_s17 = scalar_lea.vmem (!%p221_p9), [#allocation4], %s504_s10  ;;  %s804_s18 = smov (!%p221_p9), 0  }
  0x18   : > { %s255_s11 = scalar_select %p254_p10, %s764_s25, 1 }
  0x1a   : > { %s506_s12 = sshll.u32 %s255_s11, 2 }
  0x1b   : > { %s257_s15 = scalar_lea.vmem %s889_s0, %s506_s12 }
  0x1c   : > { %v259_v0 = vld [vmem:[%s257_s15] sm:$0xf] }
  0x1d LB: >> { %s538_s19 = sshll.u32 %s704_s18, 4  ;;  %s273_s28 = scalar_lea.vmem %s880_s2, %s704_s18  ;;  %vm290_vm0 = vcmask 261120   ;;  %vm346_vm1 = vcmask 60416   ;;  %s704_s18 = sphi %s804_s18, %s265_s18  }
  0x1e   : >> { %s890_s1 = sld [smem:[#allocation9_spill]]  ;;  %s308_s14 = scalar_lea.vmem %s881_s3, %s538_s19  ;;  %v600_v5 = vld [vmem:[%s273_s28] ss:$0 sm:$0xff] }
  0x1f   : >> { %v543_v2 = vld [vmem:[%s308_s14 + $0x8] sm:$0xff]  ;;  %v542_v4 = vld [vmem:[%s308_s14] sm:$0xff]  ;;  %s313_s20 = scalar_lea.vmem %s882_s4, %s704_s18 }
  0x20   : >> { %336 = vmatpush.bf16.msra.mxu1 %v543_v2  ;;  %v601_v6 = vld [vmem:[%s313_s20] ss:$0 sm:$0xff] }
  0x24   : >> { %s268_s10 = scalar_lea.vmem %s890_s1, %s538_s19  ;;  %337 = vmatpush.bf16.msra.mxu1 %v542_v4  ;;  %s528_s19 = sshll.u32 %s704_s18, 2 }
  0x25   : >> { %v540_v1 = vld [vmem:[%s268_s10 + $0x8] sm:$0xff]  ;;  %v539_v3 = vld [vmem:[%s268_s10] sm:$0xff]  ;;  %s345_s26 = scalar_lea.vmem %s800_s16, %s528_s19 [#allocation2]  ;;  %s350_s29 = scalar_lea.vmem %s802_s17, %s528_s19 [#allocation4] }
  0x26   : >> { %300 = vmatpush.bf16.msra.mxu0 %v540_v1  ;;  %s265_s18 = sadd.s32 1, %s704_s18  }
  0x27   : >> { %527 = vmatmul.msk.bf16.vlgmr.msra.gmra.mxu1 %vm290_vm0, %v259_v0  ;;  %p262_p11 = scmp.ge.s32.totalorder %s265_s18, 4  }
  0x28   : > { %s544_s0 = sshll.u32 (%p262_p11), %s764_s25, 4  ;;  %s370_s12 = sshll.u32 (%p262_p11), %s800_s16, 4  ;;  %s371_s12 = int_to_ptr.vmem [resolvable:$true] %s370_s12 }
  0x29   : > { %s369_s10 = scalar_lea.hbm (%p262_p11), %s883_s5, %s544_s0  ;;  %s353_s14 = scalar_lea.sflag (%p262_p11), [#allocation3], %s792_s9 }
  0x2a   : >> { %301 = vmatpush.bf16.msra.mxu0 %v539_v3  ;;  %s372_s13 = sshll.u32 (%p262_p11), %s369_s10, 4  ;;  %s622_s25 = scalar_lea.hbm (%p262_p11), %s883_s5, 32  ;;  %s373_s13 = int_to_ptr.hbm [resolvable:$true] %s372_s13 }
  0x2b   : > { %s616_s15 = sshra.s32 (%p262_p11), %s373_s13, 4  ;;  %s617_s15 = int_to_ptr.hbm [resolvable:$true] %s616_s15 }
  0x2c   : > { %s618_s20 = scalar_lea.hbm (%p262_p11), %s617_s15, 16  ;;  %p623_p1 = scmp.lt.s32.totalorder (%p262_p11), %s617_s15, %s883_s5 }
  0x2d   : >> { %517 = vmatmul.msk.bf16.vlgmr.msra.gmra.mxu0 %vm290_vm0, %v259_v0  ;;  %p619_p12 = scmp.ne.s32.totalorder (%p262_p11), %s617_s15, %s618_s20  ;;  %p624_p2 = scmp.lt.s32.totalorder (%p262_p11), %s622_s25, %s618_s20 }
  0x2f   : > { %p620_p13 = pnand (%p262_p11), %p619_p12, %p781_p5  ;;  %p625_p3 = por (%p262_p11), %p624_p2, %p623_p1 }
  0x31   : > { %p621_p0 = pneg (%p262_p11), %p620_p13 }
  0x33   : > { %p626_p4 = pnand (%p262_p11), %p625_p3, %p621_p0 }
  0xa4   : >> { %v339_v8 = vpop.f32.mrf.mxu1 }
  0xa5   : >> { %v340_v10 = vadd.f32 %v601_v6, %v339_v8 }
  0xa7   : >> { %v348_v12 = vpack.c.bf16 %v340_v10, %v340_v10 }
  0xa9   : >> { %351 = vst.msk [vmem:[%s350_s29] sm:$0xf] %vm346_vm1, %v348_v12 }
  0xaa   : >> { %v303_v7 = vpop.f32.mrf.mxu0 }
  0xab   : >> { %v304_v9 = vadd.f32 %v600_v5, %v303_v7 }
  0xac   : >> { %v341_v14 = vpop.f32.mrf.mxu1 }
  0xad   : >> { %v343_v11 = vpack.c.bf16 %v304_v9, %v304_v9 }
  0xae   : > { %264 = sbr.rel (!%p262_p11) target bundleno = 29 (0x1d), region = 105 }
  0xaf   : >> { %347 = vst.msk [vmem:[%s345_s26] sm:$0xf] %vm346_vm1, %v343_v11 }
  0xb2   : >> { %v305_v13 = vpop.f32.mrf.mxu0 }
  0xb3   : > { %629 = shalt.err (!%p626_p4)
}
  0xb4   : > { %s706_s16 = smov 64   ;;  %s707_s28 = smov 4  }
  0xb5   : > { %546 = dma.vmem_to_hbm [thread:$0]  (%p781_p5), %s371_s12, 256, %s373_s13, %s353_s14, %s706_s16, %s706_s16, %s707_s28  }
  0xb6   : > { %s386_s18 = scalar_lea.hbm %s884_s6, %s544_s0  ;;  %s387_s19 = sshll.u32 %s802_s17, 4  ;;  %s388_s19 = int_to_ptr.vmem [resolvable:$true] %s387_s19 }
  0xb7   : > { %s389_s26 = sshll.u32 %s386_s18, 4  ;;  %s358_s15 = scalar_lea.sflag [#allocation5], %s792_s9  ;;  %s390_s26 = int_to_ptr.hbm [resolvable:$true] %s389_s26 }
  0xb8   : > { %s644_s20 = sshra.s32 %s390_s26, 4  ;;  %s650_s12 = scalar_lea.hbm %s884_s6, 32  ;;  %s645_s20 = int_to_ptr.hbm [resolvable:$true] %s644_s20 }
  0xb9   : > { %s646_s25 = scalar_lea.hbm %s645_s20, 16  ;;  %p651_p10 = scmp.lt.s32.totalorder %s645_s20, %s884_s6 }
  0xba   : > { %p647_p7 = scmp.ne.s32.totalorder %s645_s20, %s646_s25  ;;  %p652_p11 = scmp.lt.s32.totalorder %s650_s12, %s646_s25 }
  0xbc   : > { %p648_p8 = pnand %p647_p7, %p781_p5  ;;  %p653_p12 = por %p652_p11, %p651_p10 }
  0xbe   : > { %p649_p9 = pneg %p648_p8 }
  0xc0   : > { %p654_p13 = pnand %p653_p12, %p649_p9 }
  0xc2   : > { %657 = shalt.err (!%p654_p13)
}
  0xc3   : > { %547 = dma.vmem_to_hbm [thread:$0]  (%p781_p5), %s388_s19, 256, %s390_s26, %s358_s15, %s706_s16, %s706_s16, %s707_s28  }
  0xc4 PF: > { %p557_p0 = scmp.ge.s32.totalorder %s700_s24, 2  ;;  %s404_s9 = sand.u32 1, %s688_s21  }
  0xc5   : > { %s405_s1 = scalar_lea.sflag [#allocation3], %s404_s9 }
  0xc6   : > { %p551_p1 = pnand %p557_p0, %p785_p6 }
  0xc8   : > { %p552_p2 = pneg %p551_p1 }
  0xca   : > { %679 = dma.done.wait (%p552_p2), %s405_s1, 256  }
  0xcb   : > { %681 = vsyncadd (%p552_p2), %s405_s1, 4294967040  ;;  %s415_s17 = scalar_lea.sflag [#allocation5], %s404_s9 }
  0xcc   : > { %683 = dma.done.wait (%p552_p2), %s415_s17, 256  }
  0xcd   : > { %685 = vsyncadd (%p552_p2), %s415_s17, 4294967040  ;;  %p20_p5 = scmp.ge.s32.totalorder %s768_s27, 4   ;;  %s891_s21 = smov %s692_s22 }
  0xce   : > { %s892_s22 = smov %s696_s23  ;;  %s893_s23 = smov %s779_s30 }
  0xcf   : > { %s894_s24 = smov %s768_s27  ;;  %22 = sbr.rel (!%p20_p5) target bundleno = 8 (0x8), region = 116 }
  0xd4   :  { %421 = vsyncpa [#allocation3], 1 }
  0xd5   :  { %423 = vsyncpa [#allocation3 + $0x1], 1 }
  0xd6   :  { %424 = vsyncpa [#allocation5], 1 }
  0xd7   :  { %426 = vsyncpa [#allocation5 + $0x1], 1 }

</bundles_post_ra>
